<compile_context>
chip_gen: v7x
topology: tpu7x:2x2x1
jax: 0.10.0
libtpu: 0.0.40
codegen_flags: <defaults>
</compile_context>

<pallas_src>
import jax
import jax.numpy as jnp
from jax.experimental import pallas as pl
from jax.experimental.pallas import tpu as pltpu


def _round_up(x, m):
    return (x + m - 1) // m * m


def _sublane(dtype):
    # Packed-row tile along the second-to-last dim: f32 -> 8, bf16 -> 16, int8/fp8 -> 32.
    return {4: 8, 2: 16, 1: 32}.get(jnp.dtype(dtype).itemsize, 8)


def _vmem_capacity_bytes():
    default = 64 * 1024 * 1024            # conservative: v7x per-TC VMEM
    try:
        info = pltpu.get_tpu_info()
    except Exception:
        return default
    for attr in ("vmem_capacity_bytes", "vmem_bytes", "vmem_size_bytes"):
        cap = getattr(info, attr, None)
        if cap:
            return int(cap)
    return default


def _vmem_usage_bytes(tm, tk, d_model, x_bytes, w_bytes, o_bytes, multi_k):
    """Rough VMEM footprint assuming Pallas' default double buffering."""
    xb = 2 * tm * d_model * x_bytes           # x tile
    w1b = 2 * d_model * tk * w_bytes          # W1 slab
    w2b = 2 * tk * d_model * w_bytes          # W2 slab
    bb = 2 * (tk + d_model) * w_bytes         # biases
    ob = 2 * tm * d_model * o_bytes           # output tile
    hb = tm * tk * 4                          # f32 hidden intermediate
    accb = tm * d_model * 4 if multi_k else 0 # f32 accumulator scratch
    return xb + w1b + w2b + bb + ob + hb + accb


def _pick_tiles(rows8, d_model, dff, x_bytes, w_bytes, o_bytes, sub, budget):
    # 1) Prefer fully-resident weights (reduction axis collapses to one step):
    #    weights are DMA'd once instead of once per row tile.
    for cand in (512, 256, 128, 64, 32, 16, 8):
        if cand % sub:
            continue
        tm = min(cand, rows8)
        if _vmem_usage_bytes(tm, dff, d_model, x_bytes, w_bytes, o_bytes,
                             multi_k=False) <= budget:
            return tm, dff
    # 2) Otherwise tile the dff reduction.  Large tm first (weight-stream
    #    intensity scales with tm), then the largest tk that fits (fewer
    #    accumulator read-modify-writes and grid steps).
    tk_cands = [c for c in (1024, 512, 256, 128) if c <= dff]
    for cand in (1024, 512, 256, 128, 64, 32, 16, 8):
        if cand % sub:
            continue
        tm = min(cand, rows8)
        for tk in tk_cands:
            if _vmem_usage_bytes(tm, tk, d_model, x_bytes, w_bytes, o_bytes,
                                 multi_k=True) <= budget:
                return tm, tk
    # 3) Last resort: smallest legal tiles.
    return min(sub, rows8), min(128, dff)


def _ffn_kernel_resident(x_ref, w1_ref, b1_ref, w2_ref, b2_ref, o_ref):
    # Single reduction step: weights are VMEM-resident (constant index maps),
    # no accumulator scratch, one lane-dense store per row tile.
    h = jnp.dot(x_ref[...], w1_ref[...], preferred_element_type=jnp.float32)
    h = jnp.maximum(h + b1_ref[...].astype(jnp.float32), 0.0)            # ReLU
    out = jnp.dot(h.astype(w2_ref.dtype), w2_ref[...],
                  preferred_element_type=jnp.float32)
    o_ref[...] = (out + b2_ref[...].astype(jnp.float32)).astype(o_ref.dtype)


def _ffn_kernel_tiled(x_ref, w1_ref, b1_ref, w2_ref, b2_ref, o_ref, acc_ref):
    # dff (hidden) is a tiled reduction grid axis; f32 VMEM accumulator is
    # resident across it (init at k==0, bias-add + writeback at k==last).
    k = pl.program_id(1)

    @pl.when(k == 0)
    def _():
        acc_ref[...] = jnp.zeros_like(acc_ref)

    h = jnp.dot(x_ref[...], w1_ref[...], preferred_element_type=jnp.float32)
    h = jnp.maximum(h + b1_ref[...].astype(jnp.float32), 0.0)            # ReLU
    acc_ref[...] += jnp.dot(h.astype(w2_ref.dtype), w2_ref[...],
                            preferred_element_type=jnp.float32)

    @pl.when(k == pl.num_programs(1) - 1)
    def _():
        o_ref[...] = (acc_ref[...]
                      + b2_ref[...].astype(jnp.float32)).astype(o_ref.dtype)


def position_wise_ffn(x, w1, b1, w2, b2, *, row_tile=None, hidden_tile=None):
    """x: (..., d_model). w1: (d_model, dff), b1: (dff,),
    w2: (dff, d_model), b2: (d_model,). Returns same shape/dtype as x."""
    orig_shape = x.shape
    d_model = orig_shape[-1]
    dff = w1.shape[1]

    x2d = x.reshape(-1, d_model)
    n_rows = x2d.shape[0]

    sub = _sublane(x.dtype)
    rows8 = _round_up(n_rows, sub)

    x_bytes = jnp.dtype(x.dtype).itemsize
    w_bytes = jnp.dtype(w1.dtype).itemsize
    o_bytes = x_bytes

    cap = _vmem_capacity_bytes()
    vmem_limit = int(cap * 0.875)   # ~110 MiB on v5e/v6e, ~56 MiB on v7x
    tile_budget = int(cap * 0.70)   # headroom for compiler-internal scratch

    tm_auto, tk_auto = _pick_tiles(rows8, d_model, dff, x_bytes, w_bytes,
                                   o_bytes, sub, tile_budget)
    tm = tm_auto if row_tile is None else _round_up(min(row_tile, rows8), sub)
    tk = tk_auto if hidden_tile is None else min(hidden_tile, dff)
    if tk < dff:
        tk = min(_round_up(tk, 128), dff)   # keep lane-tile legality

    # Guarantee >=2 row tiles when there's enough work so v7x's two
    # TensorCores both get a shard of the "parallel" row axis.
    if rows8 >= 256:
        while tm >= rows8 and tm >= 256:
            tm = _round_up(tm // 2, sub)

    n_padded = _round_up(n_rows, tm)
    if n_padded != n_rows:
        x2d = jnp.pad(x2d, ((0, n_padded - n_rows), (0, 0)))

    b2_2d = b2.reshape(1, d_model)

    if tk >= dff:
        # Weight-resident, single-reduction-step path.
        b1_2d = b1.reshape(1, dff)
        out = pl.pallas_call(
            _ffn_kernel_resident,
            out_shape=jax.ShapeDtypeStruct((n_padded, d_model), x.dtype),
            grid_spec=pltpu.PrefetchScalarGridSpec(
                num_scalar_prefetch=0,
                grid=(n_padded // tm,),
                in_specs=[
                    pl.BlockSpec((tm, d_model), lambda i: (i, 0)),    # x tile
                    pl.BlockSpec((d_model, dff), lambda i: (0, 0)),   # W1 (resident)
                    pl.BlockSpec((1, dff), lambda i: (0, 0)),         # b1
                    pl.BlockSpec((dff, d_model), lambda i: (0, 0)),   # W2 (resident)
                    pl.BlockSpec((1, d_model), lambda i: (0, 0)),     # b2
                ],
                out_specs=pl.BlockSpec((tm, d_model), lambda i: (i, 0)),
            ),
            compiler_params=pltpu.CompilerParams(
                dimension_semantics=("parallel",),
                vmem_limit_bytes=vmem_limit,
            ),
        )(x2d, w1, b1_2d, w2, b2_2d)
    else:
        # Tiled dff reduction (weights too big to keep resident).
        # Zero-padding dff is exact: zero W1 columns + zero bias give
        # relu(0)=0 rows that contribute nothing through W2.
        dff_padded = _round_up(dff, tk)
        if dff_padded != dff:
            pad_h = dff_padded - dff
            w1 = jnp.pad(w1, ((0, 0), (0, pad_h)))
            b1 = jnp.pad(b1, ((0, pad_h),))
            w2 = jnp.pad(w2, ((0, pad_h), (0, 0)))
        b1_2d = b1.reshape(1, dff_padded)

        out = pl.pallas_call(
            _ffn_kernel_tiled,
            out_shape=jax.ShapeDtypeStruct((n_padded, d_model), x.dtype),
            grid_spec=pltpu.PrefetchScalarGridSpec(
                num_scalar_prefetch=0,
                grid=(n_padded // tm, dff_padded // tk),   # reduction axis last
                in_specs=[
                    pl.BlockSpec((tm, d_model), lambda i, k: (i, 0)),   # x tile
                    pl.BlockSpec((d_model, tk), lambda i, k: (0, k)),   # W1 slab
                    pl.BlockSpec((1, tk), lambda i, k: (0, k)),         # b1 slab
                    pl.BlockSpec((tk, d_model), lambda i, k: (k, 0)),   # W2 slab
                    pl.BlockSpec((1, d_model), lambda i, k: (0, 0)),    # b2
                ],
                out_specs=pl.BlockSpec((tm, d_model), lambda i, k: (i, 0)),
                scratch_shapes=[pltpu.VMEM((tm, d_model), jnp.float32)],
            ),
            compiler_params=pltpu.CompilerParams(
                dimension_semantics=("parallel", "arbitrary"),
                vmem_limit_bytes=vmem_limit,
            ),
        )(x2d, w1, b1_2d, w2, b2_2d)

    out = out[:n_rows]
    return out.reshape(orig_shape)


def init_params(key, d_model, dff, dtype=jnp.float32):
    """nn.Linear-style init; weights kept in math-friendly (in, out) layout."""
    k1, k2, k3, k4 = jax.random.split(key, 4)
    lim1 = 1.0 / jnp.sqrt(d_model)
    lim2 = 1.0 / jnp.sqrt(dff)
    w1 = jax.random.uniform(k1, (d_model, dff), dtype, -lim1, lim1)
    b1 = jax.random.uniform(k2, (dff,), dtype, -lim1, lim1)
    w2 = jax.random.uniform(k3, (dff, d_model), dtype, -lim2, lim2)
    b2 = jax.random.uniform(k4, (d_model,), dtype, -lim2, lim2)
    return w1, b1, w2, b2


def _ref_ffn(x, w1, b1, w2, b2):
    xf, w1f, b1f = x.astype(jnp.float32), w1.astype(jnp.float32), b1.astype(jnp.float32)
    w2f, b2f = w2.astype(jnp.float32), b2.astype(jnp.float32)
    return jnp.maximum(xf @ w1f + b1f, 0.0) @ w2f + b2f


if __name__ == "__main__":
    key = jax.random.PRNGKey(0)
    kx1, kp1, kx2, kp2, kx3, kp3 = jax.random.split(key, 6)

    # Test 1: tiny f32 shapes (weight-resident single-step path, auto tiling).
    batch, seq, d_model, dff = 2, 8, 32, 64
    x1 = jax.random.normal(kx1, (batch, seq, d_model), jnp.float32)
    p1 = init_params(kp1, d_model, dff)
    y1 = jax.block_until_ready(position_wise_ffn(x1, *p1))
    assert y1.shape == x1.shape
    assert jnp.allclose(y1, _ref_ffn(x1, *p1), atol=1e-4, rtol=1e-4), "mismatch (test 1)"

    # Test 2: forced small tiles to exercise the multi-row / tiled-dff
    # accumulator path (2 row steps x 2 k steps) while staying small.
    batch2, seq2, d_model2, dff2 = 2, 16, 128, 256
    x2 = jax.random.normal(kx2, (batch2, seq2, d_model2), jnp.float32)
    p2 = init_params(kp2, d_model2, dff2)
    y2 = jax.block_until_ready(
        position_wise_ffn(x2, *p2, row_tile=16, hidden_tile=128))
    assert y2.shape == x2.shape
    assert jnp.allclose(y2, _ref_ffn(x2, *p2), atol=1e-4, rtol=1e-4), "mismatch (test 2)"

    # Test 3: bf16 inputs/weights exercise dtype-aware (16-row) sublane tiling.
    batch3, seq3, d_model3, dff3 = 2, 24, 128, 512
    x3 = jax.random.normal(kx3, (batch3, seq3, d_model3), jnp.float32).astype(jnp.bfloat16)
    p3 = init_params(kp3, d_model3, dff3, dtype=jnp.bfloat16)
    y3 = jax.block_until_ready(position_wise_ffn(x3, *p3))
    assert y3.shape == x3.shape and y3.dtype == jnp.bfloat16
    assert jnp.allclose(y3.astype(jnp.float32), _ref_ffn(x3, *p3),
                        atol=1e-1, rtol=1e-1), "mismatch (test 3)"

    print("KERNEL_OK")
</pallas_src>

<mosaic_0001>
module attributes {stable_mosaic.version = 11 : i64} {
  func.func @_ffn_kernel_resident(%arg0: i32, %arg1: memref<16x32xf32, #tpu.memory_space<vmem>>, %arg2: memref<32x64xf32, #tpu.memory_space<vmem>>, %arg3: memref<1x64xf32, #tpu.memory_space<vmem>>, %arg4: memref<64x32xf32, #tpu.memory_space<vmem>>, %arg5: memref<1x32xf32, #tpu.memory_space<vmem>>, %arg6: memref<16x32xf32, #tpu.memory_space<vmem>>) attributes {dimension_semantics = [#tpu.dimension_semantics<parallel>], iteration_bounds = array<i64: 1>, scalar_prefetch = 0 : i64, scratch_operands = 0 : i64, tpu.core_type = #tpu.core_type<tc>, window_params = [{transform_indices = @transform_0, window_bounds = array<i64: 16, 32>}, {pipeline_mode = #tpu.pipeline_mode<synchronous>, transform_indices = @transform_1, window_bounds = array<i64: 32, 64>}, {pipeline_mode = #tpu.pipeline_mode<synchronous>, transform_indices = @transform_2, window_bounds = array<i64: 1, 64>}, {pipeline_mode = #tpu.pipeline_mode<synchronous>, transform_indices = @transform_3, window_bounds = array<i64: 64, 32>}, {pipeline_mode = #tpu.pipeline_mode<synchronous>, transform_indices = @transform_4, window_bounds = array<i64: 1, 32>}, {transform_indices = @transform_5, window_bounds = array<i64: 16, 32>}]} {
    %c0 = arith.constant 0 : index
    %c0_0 = arith.constant 0 : index
    %0 = vector.load %arg1[%c0, %c0_0] : memref<16x32xf32, #tpu.memory_space<vmem>>, vector<16x32xf32>
    %c0_1 = arith.constant 0 : index
    %c0_2 = arith.constant 0 : index
    %1 = vector.load %arg2[%c0_1, %c0_2] : memref<32x64xf32, #tpu.memory_space<vmem>>, vector<32x64xf32>
    %cst = arith.constant dense<0.000000e+00> : vector<16x64xf32>
    %2 = tpu.matmul %0, %1, %cst {dimension_numbers = #tpu.dot_dimension_numbers<[1], [0], [0], [1], [0, 0, 1, 1], [], []>} : vector<16x32xf32>, vector<32x64xf32>, vector<16x64xf32> -> vector<16x64xf32>
    %c0_3 = arith.constant 0 : index
    %c0_4 = arith.constant 0 : index
    %3 = vector.load %arg3[%c0_3, %c0_4] : memref<1x64xf32, #tpu.memory_space<vmem>>, vector<1x64xf32>
    %4 = vector.broadcast %3 : vector<1x64xf32> to vector<16x64xf32>
    %5 = arith.addf %2, %4 : vector<16x64xf32>
    %cst_5 = arith.constant 0.000000e+00 : f32
    %6 = vector.broadcast %cst_5 : f32 to vector<16x64xf32>
    %7 = arith.maximumf %5, %6 : vector<16x64xf32>
    %c0_6 = arith.constant 0 : index
    %c0_7 = arith.constant 0 : index
    %8 = vector.load %arg4[%c0_6, %c0_7] : memref<64x32xf32, #tpu.memory_space<vmem>>, vector<64x32xf32>
    %cst_8 = arith.constant dense<0.000000e+00> : vector<16x32xf32>
    %9 = tpu.matmul %7, %8, %cst_8 {dimension_numbers = #tpu.dot_dimension_numbers<[1], [0], [0], [1], [0, 0, 1, 1], [], []>} : vector<16x64xf32>, vector<64x32xf32>, vector<16x32xf32> -> vector<16x32xf32>
    %c0_9 = arith.constant 0 : index
    %c0_10 = arith.constant 0 : index
    %10 = vector.load %arg5[%c0_9, %c0_10] : memref<1x32xf32, #tpu.memory_space<vmem>>, vector<1x32xf32>
    %11 = vector.broadcast %10 : vector<1x32xf32> to vector<16x32xf32>
    %12 = arith.addf %9, %11 : vector<16x32xf32>
    %c0_11 = arith.constant 0 : index
    %c0_12 = arith.constant 0 : index
    %13 = vector.load %arg6[%c0_11, %c0_12] : memref<16x32xf32, #tpu.memory_space<vmem>>, vector<16x32xf32>
    tpu.vector_store %arg6[%c0_11, %c0_12], %12 {strides = array<i32>} : memref<16x32xf32, #tpu.memory_space<vmem>>, vector<16x32xf32>,
    return
  }
  func.func @transform_0(%arg0: i32) -> (i32, i32) {
    %c0_i32 = arith.constant 0 : i32
    %c0_i32_0 = arith.constant 0 : i32
    return %arg0, %c0_i32 : i32, i32
  }
  func.func @transform_1(%arg0: i32) -> (i32, i32) {
    %c0_i32 = arith.constant 0 : i32
    %c0_i32_0 = arith.constant 0 : i32
    %c0_i32_1 = arith.constant 0 : i32
    return %c0_i32, %c0_i32_0 : i32, i32
  }
  func.func @transform_2(%arg0: i32) -> (i32, i32) {
    %c0_i32 = arith.constant 0 : i32
    %c0_i32_0 = arith.constant 0 : i32
    %c0_i32_1 = arith.constant 0 : i32
    return %c0_i32, %c0_i32_0 : i32, i32
  }
  func.func @transform_3(%arg0: i32) -> (i32, i32) {
    %c0_i32 = arith.constant 0 : i32
    %c0_i32_0 = arith.constant 0 : i32
    %c0_i32_1 = arith.constant 0 : i32
    return %c0_i32, %c0_i32_0 : i32, i32
  }
  func.func @transform_4(%arg0: i32) -> (i32, i32) {
    %c0_i32 = arith.constant 0 : i32
    %c0_i32_0 = arith.constant 0 : i32
    %c0_i32_1 = arith.constant 0 : i32
    return %c0_i32, %c0_i32_0 : i32, i32
  }
  func.func @transform_5(%arg0: i32) -> (i32, i32) {
    %c0_i32 = arith.constant 0 : i32
    %c0_i32_0 = arith.constant 0 : i32
    return %arg0, %c0_i32 : i32, i32
  }
}

</mosaic_0001>

<bundles_post_ra>
// kernel: tpu_custom_call.1
= control target key start
LH: loop header
LB: loop body
LE: loop exit
PB: predicated region body
PF: predicated region fallthrough
CT: control target
= control target key end

     0   :  { %vm34_vm0 = vcmask 261120   ;;  %s433_s0 = inlined_call_operand.vmem [shape: f32[16,32], index: 0, kind: input, shape index: {}]   ;;  %s434_s1 = inlined_call_operand.vmem [shape: f32[32,64], index: 1, kind: input, shape index: {}]   ;;  %s435_s2 = inlined_call_operand.vmem [shape: f32[1,64], index: 2, kind: input, shape index: {}]   ;;  %s436_s3 = inlined_call_operand.vmem [shape: f32[64,32], index: 3, kind: input, shape index: {}]   ;;  %s437_s4 = inlined_call_operand.vmem [shape: f32[1,32], index: 4, kind: input, shape index: {}]   ;;  %s438_s5 = inlined_call_operand.hbm [shape: f32[16,32], index: 5, kind: output, shape index: {}]  }
   0x1   :  { %v23_v0 = vld [vmem:[%s434_s1] sm:$0xff]  ;;  %v24_v1 = vld [vmem:[%s434_s1 + $0x8] sm:$0xff]  ;;  %v25_v2 = vld [vmem:[%s434_s1 + $0x10] sm:$0xff] }
   0x2   :  { %v285_v3 = vpack.c.bf16 %v24_v1, %v23_v0  ;;  %v26_v4 = vld [vmem:[%s434_s1 + $0x18] sm:$0xff]  ;;  %v21_v5 = vld [vmem:[%s433_s0] sm:$0xff]  ;;  %v119_v8 = vld [vmem:[%s436_s3 + $0x8] sm:$0xff] }
   0x3   :  { %v289_v6 = vpack.c.bf16 %v26_v4, %v25_v2  ;;  %263 = vmatprep.mubr.msk.f32.mxu0 %vm34_vm0, %v21_v5  ;;  %v118_v7 = vld [vmem:[%s436_s3] sm:$0xff]  ;;  %v120_v9 = vld [vmem:[%s436_s3 + $0x10] sm:$0xff]  ;;  %v121_v11 = vld [vmem:[%s436_s3 + $0x18] sm:$0xff] }
   0x4   :  { %286 = vmatprep.subr.bf16.mxu0 %v285_v3  ;;  %v293_v10 = vpack.c.bf16 %v119_v8, %v118_v7  ;;  %v297_v12 = vpack.c.bf16 %v121_v11, %v120_v9  ;;  %v122_v13 = vld [vmem:[%s436_s3 + $0x20] sm:$0xff]  ;;  %v123_v14 = vld [vmem:[%s436_s3 + $0x28] sm:$0xff] }
   0x5   :  { %288 = vmatpush3.bf16.msra.mxu0 %v285_v3 }
   0x6   :  { %10 = vsyncpa [#allocation3], 0  ;;  %290 = vmatprep.subr.bf16.mxu0 %v289_v6  ;;  %294 = vmatprep.subr.bf16.mxu1 %v293_v10  ;;  %v301_v15 = vpack.c.bf16 %v123_v14, %v122_v13  ;;  %v22_v16 = vld [vmem:[%s433_s0 + $0x8] sm:$0xff]  ;;  %v124_v17 = vld [vmem:[%s436_s3 + $0x30] sm:$0xff]  ;;  %vm133_vm1 = vcmask 523264  }
   0x7   :  { %296 = vmatpush3.bf16.msra.mxu1 %v293_v10  ;;  %v125_v18 = vld [vmem:[%s436_s3 + $0x38] sm:$0xff]  ;;  %v233_v20 = vld [vmem:[%s435_s2] ss:$0 sm:$0xff]  ;;  %s336_s3 = smov [#allocation2]  }
   0x8   :  { %298 = vmatprep.subr.bf16.mxu1 %v297_v12  ;;  %v305_v19 = vpack.c.bf16 %v125_v18, %v124_v17  ;;  %v236_v27 = vld [vmem:[%s437_s4] ss:$0 sm:$0xff]  ;;  %s222_s23 = sshll.u32 %s336_s3, 4  ;;  %s223_s23 = int_to_ptr.vmem [resolvable:$true] %s222_s23 }
   0x9   :  { %292 = vmatpush3.bf16.msra.mxu0 %v289_v6  ;;  %s312_s2 = scalar_lea.vmem %s223_s23, 256  ;;  %p317_p1 = scmp.lt.s32.totalorder %s223_s23, %s223_s23 }
   0xa   :  { %p313_p0 = scmp.ne.s32.totalorder %s223_s23, %s312_s2  ;;  %p318_p2 = scmp.lt.s32.totalorder %s312_s2, %s312_s2 }
   0xb   :  { %300 = vmatpush3.bf16.msra.mxu1 %v297_v12 }
   0xc   :  { %264 = vmatmul.mubr.msk.f32.vlgmr.msra.gmra.mrb[0].mxu0 %vm34_vm0, %v22_v16  ;;  %302 = vmatprep.subr.bf16.mxu1 %v301_v15  ;;  %p319_p3 = por %p318_p2, %p317_p1 }
   0xe   :  { %p320_p4 = pnand %p319_p3, %p313_p0 }
   0xf   :  { %304 = vmatpush3.bf16.msra.mxu1 %v301_v15 }
  0x10   :  { %306 = vmatprep.subr.bf16.mxu1 %v305_v19 }
  0x13   :  { %308 = vmatpush3.bf16.msra.mxu1 %v305_v19 }
  0xdf   :  { %v265_v21 = vpop.f32.mrb[0].mxu0 }
  0xe0   :  { %v113_v22 = vadd.f32 %v265_v21, %v233_v20  ;;  %v107_v23 = vpop.f32.mrb[1].mxu0 }
  0xe1   :  { %v108_v24 = vadd.f32 %v233_v20, %v107_v23 }
  0xe2   :  { %v117_v26 = vmax.f32 %v113_v22, 0.0 }
  0xe3   :  { %v116_v25 = vmax.f32 %v108_v24, 0.0 }
  0xe5   :  { %282 = vmatprep.mubr.msk.f32.mxu1 %vm133_vm1, %v116_v25 }
  0xe6   :  { %283 = vmatmul.mubr.msk.f32.vlgmr.msra.gmra.mrb[0].mxu1 %vm133_vm1, %v117_v26 }
 0x1b9   :  { %v284_v28 = vpop.f32.mrb[0].mxu1 }
 0x1ba   :  { %v212_v29 = vadd.f32 %v284_v28, %v236_v27  ;;  %v206_v30 = vpop.f32.mrb[1].mxu1 }
 0x1bb   :  { %v207_v31 = vadd.f32 %v236_v27, %v206_v30 }
 0x1bc   :  { %216 = vst.msk [vmem:[#allocation2 + $0x8] sm:$0xff] %vm34_vm0, %v212_v29 }
 0x1bd   :  { %215 = vst.msk [vmem:[#allocation2] sm:$0xff] %vm34_vm0, %v207_v31 }
 0x1be   :  { %323 = shalt.err (!%p320_p4)
}
 0x1bf   :  { %s324_s25 = scalar_lea.hbm %s438_s5, 256 }
 0x1c0   :  { %p325_p5 = scmp.ne.s32.totalorder %s438_s5, %s324_s25  ;;  %p328_p6 = scmp.lt.u32.totalorder %s324_s25, %s438_s5 }
 0x1c2   :  { %p330_p7 = pnand %p328_p6, %p325_p5 }
 0x1c4   :  { %333 = shalt.err (!%p330_p7)
}
 0x1c5   :  { %s337_s30 = smov 128   ;;  %s338_s6 = smov 8  }
 0x1c6   :  { %228 = dma.vmem_to_hbm [thread:$0]  %s223_s23, 256, %s438_s5, [#allocation3], %s337_s30, %s337_s30, %s338_s6  }
 0x1c7   :  { %334 = dma.done.wait [#allocation3], 256  }
 0x1c8   :  { %335 = vsyncadd [#allocation3], 4294967040 }
 0x1c9   :  { %232 = vsyncpa [#allocation3], 1 }

</bundles_post_ra>
